<compile_context>
chip_gen: v5e
topology: v5e:2x2
jax: 0.10.0
libtpu: 0.0.40
codegen_flags: <defaults>
</compile_context>

<pallas_src>
import math
import functools

import jax
import jax.numpy as jnp
from jax import lax
from jax.experimental import pallas as pl
from jax.experimental.pallas import tpu as pltpu


def _ernie_attention_kernel(x_ref, q_ref, k_ref, v_ref, mask_ref, ent_ref,
                            wo_ref, bo_ref, wd_ref, bd_ref, gamma_ref, beta_ref,
                            out_ref, ctx_scratch, *, eps):
    """One grid step = one (batch, query-tile) slab of the output."""
    nh, hd = q_ref.shape[1], q_ref.shape[3]

    q = q_ref[0]                      # (nh, tq, hd) bf16, pre-scaled by 1/sqrt(hd)
    k = k_ref[0]                      # (nh, S,  hd) bf16
    v = v_ref[0]                      # (nh, S,  hd) bf16
    mask = mask_ref[0]                # (1, S) f32 additive key-padding mask

    # Scores, batched over heads (single MXU dot_general), f32 accumulation.
    s = jnp.einsum("nqd,nkd->nqk", q, k,
                   preferred_element_type=jnp.float32)             # (nh, tq, S)
    s = s + mask                      # one broadcast per grid step (not per head)

    # Softmax in f32; exact EUP reciprocal for parity with the f32 reference.
    m = jnp.max(s, axis=-1, keepdims=True)
    e = jnp.exp(s - m)                # (optional: bf16 exp on v6e/v7x; keep f32 for v5e)
    r = pl.reciprocal(jnp.sum(e, axis=-1, keepdims=True), approx=False)
    p = (e * r).astype(jnp.bfloat16)                                # (nh, tq, S)

    # Per-head context, batched over heads.
    ctx = jnp.einsum("nqk,nkd->nqd", p, v,
                     preferred_element_type=jnp.float32)            # (nh, tq, hd)

    # Re-pack head-major context into (tq, H): static per-head stores (relayout
    # only, no compute) so the output projection keeps a full K=H MXU matmul.
    for h in range(nh):
        ctx_scratch[:, h * hd:(h + 1) * hd] = ctx[h]

    # MHA output projection + entity fusion.
    attn = ctx_scratch[...].astype(jnp.bfloat16)                    # (tq, H)
    proj = jnp.dot(attn, wo_ref[...],
                   preferred_element_type=jnp.float32) + bo_ref[...]
    proj = proj + ent_ref[0]

    # Dense projection.
    dense = jnp.dot(proj.astype(jnp.bfloat16), wd_ref[...],
                    preferred_element_type=jnp.float32) + bd_ref[...]
    # TODO(synk): dropout layers are identity in eval mode; no RNG drop applied.

    # Residual + LayerNorm (f32).
    res = dense + x_ref[0]
    mean = jnp.mean(res, axis=-1, keepdims=True)
    var = jnp.mean(jnp.square(res - mean), axis=-1, keepdims=True)
    normed = (res - mean) * lax.rsqrt(var + eps)
    out_ref[0] = (normed * gamma_ref[...] + beta_ref[...]).astype(out_ref.dtype)


def _pick_tq(S, requested):
    """Largest multiple-of-8 divisor of S <= requested, preferring >= 2 tiles."""
    cands = [t for t in range(8, min(requested, S) + 1, 8) if S % t == 0]
    if not cands:
        return S                       # ragged/odd S: single full-sequence tile
    multi = [t for t in cands if S // t >= 2]   # keep both v7x TCs busy
    return max(multi) if multi else max(cands)


def _vmem_limit_bytes(S, H, nh, hd, tq):
    """Explicit scoped-VMEM budget from the actual block sizes (+headroom)."""
    f32, bf16 = 4, 2
    db = 2                              # double-buffered pipelined blocks
    blocks = db * (tq * H * f32                 # hidden (residual) tile
                   + nh * tq * hd * bf16        # Q tile
                   + 2 * nh * S * hd * bf16     # K + V (full seq, head-major)
                   + S * f32                    # additive mask
                   + tq * H * f32               # entity tile
                   + tq * H * f32)              # output tile
    weights = 2 * H * H * bf16 + 6 * H * f32    # single-buffered (unblocked VMEM)
    scratch = tq * H * f32
    temps = 3 * nh * tq * S * f32 + nh * tq * S * bf16 + 6 * tq * H * f32
    est = blocks + weights + scratch + temps
    # ~40% headroom; floor 32 MiB, cap 64 MiB so the default also fits v7x.
    return int(min(max(1.4 * est, 32 * 2**20), 64 * 2**20))


def ernie_attention(hidden, key_padding_mask, entity, params, *, num_heads,
                    eps=1e-12, tq=256, vmem_limit_bytes=None):
    B, S, H = hidden.shape
    nh = num_heads
    assert H % nh == 0
    hd = H // nh

    tq = _pick_tq(S, tq)
    n_q = S // tq

    if entity is None:
        entity = jnp.zeros_like(hidden)

    # Additive key-padding mask (True = ignore key), matching the f32 reference.
    mask_add = jnp.where(key_padding_mask, -1e9, 0.0).astype(jnp.float32)
    mask_add = mask_add.reshape(B, 1, S)

    # --- Q/K/V projection pre-pass: once per token (no per-query-tile redundancy).
    # Softmax scale folded into the Q weights; output head-major bf16 (B, nh, S, hd).
    scale = 1.0 / math.sqrt(hd)
    wqkv = jnp.concatenate([params["wq"] * scale, params["wk"], params["wv"]], axis=1)
    bqkv = jnp.concatenate([params["bq"] * scale, params["bk"], params["bv"]], axis=1)
    qkv = jnp.einsum("bsh,hf->bsf", hidden.astype(jnp.float32), wqkv) + bqkv
    qkv = qkv.reshape(B, S, 3, nh, hd).transpose(2, 0, 3, 1, 4)   # (3, B, nh, S, hd)
    q_h = qkv[0].astype(jnp.bfloat16)
    k_h = qkv[1].astype(jnp.bfloat16)
    v_h = qkv[2].astype(jnp.bfloat16)

    wo = params["wo"].astype(jnp.bfloat16)
    wd = params["wd"].astype(jnp.bfloat16)

    if vmem_limit_bytes is None:
        vmem_limit_bytes = _vmem_limit_bytes(S, H, nh, hd, tq)

    kernel = functools.partial(_ernie_attention_kernel, eps=eps)

    # Constant-index weight/bias/LN blocks: whole array in VMEM, single-buffered.
    def vmem_full():
        return pl.BlockSpec(memory_space=pltpu.MemorySpace.VMEM)

    return pl.pallas_call(
        kernel,
        out_shape=jax.ShapeDtypeStruct((B, S, H), jnp.float32),
        grid_spec=pltpu.PrefetchScalarGridSpec(
            num_scalar_prefetch=0,
            grid=(B, n_q),
            in_specs=[
                pl.BlockSpec((1, tq, H), lambda b, qi: (b, qi, 0)),          # hidden (residual tile)
                pl.BlockSpec((1, nh, tq, hd), lambda b, qi: (b, 0, qi, 0)),  # Q tile (head-major, bf16)
                pl.BlockSpec((1, nh, S, hd), lambda b, qi: (b, 0, 0, 0)),    # K (head-major, full seq)
                pl.BlockSpec((1, nh, S, hd), lambda b, qi: (b, 0, 0, 0)),    # V (head-major, full seq)
                pl.BlockSpec((1, 1, S), lambda b, qi: (b, 0, 0)),            # additive key-pad mask
                pl.BlockSpec((1, tq, H), lambda b, qi: (b, qi, 0)),          # entity tile
                vmem_full(),   # wo   (bf16)
                vmem_full(),   # bo
                vmem_full(),   # wd   (bf16)
                vmem_full(),   # bd
                vmem_full(),   # gamma
                vmem_full(),   # beta
            ],
            out_specs=pl.BlockSpec((1, tq, H), lambda b, qi: (b, qi, 0)),
            scratch_shapes=[pltpu.VMEM((tq, H), jnp.float32)],
        ),
        compiler_params=pltpu.CompilerParams(
            dimension_semantics=("parallel", "parallel"),
            vmem_limit_bytes=vmem_limit_bytes,
        ),
    )(hidden, q_h, k_h, v_h, mask_add, entity,
      wo, params["bo"], wd, params["bd"], params["gamma"], params["beta"])


def reference(hidden, key_padding_mask, entity, p, *, num_heads, eps=1e-12):
    """Pure-JAX f32 re-implementation of the PyTorch forward for verification."""
    B, S, H = hidden.shape
    hd = H // num_heads

    def split(t):
        return t.reshape(B, S, num_heads, hd).transpose(0, 2, 1, 3)

    q = split(hidden @ p["wq"] + p["bq"])
    k = split(hidden @ p["wk"] + p["bk"])
    v = split(hidden @ p["wv"] + p["bv"])
    s = jnp.einsum("bhqd,bhkd->bhqk", q, k) / jnp.sqrt(float(hd))
    s = s + jnp.where(key_padding_mask, -1e9, 0.0)[:, None, None, :]
    a = jax.nn.softmax(s, axis=-1)
    o = jnp.einsum("bhqk,bhkd->bhqd", a, v).transpose(0, 2, 1, 3).reshape(B, S, H)
    o = o @ p["wo"] + p["bo"]
    o = o + entity
    d = o @ p["wd"] + p["bd"]
    r = d + hidden
    mean = r.mean(-1, keepdims=True)
    var = ((r - mean) ** 2).mean(-1, keepdims=True)
    return (r - mean) / jnp.sqrt(var + eps) * p["gamma"] + p["beta"]


if __name__ == "__main__":
    B, S, H, NH = 2, 16, 32, 4
    key = jax.random.PRNGKey(0)
    ks = jax.random.split(key, 12)

    hidden = jax.random.normal(ks[0], (B, S, H), jnp.float32)
    entity = jax.random.normal(ks[1], (B, S, H), jnp.float32) * 0.1
    # key_padding_mask: True = padded (ignored) key; pad last 2 tokens of batch 1.
    key_padding_mask = jnp.zeros((B, S), jnp.bool_).at[1, -2:].set(True)

    init = lambda k, shape, scale=0.05: jax.random.normal(k, shape, jnp.float32) * scale
    params = {
        "wq": init(ks[2], (H, H)), "bq": init(ks[3], (1, H)),
        "wk": init(ks[4], (H, H)), "bk": init(ks[5], (1, H)),
        "wv": init(ks[6], (H, H)), "bv": init(ks[7], (1, H)),
        "wo": init(ks[8], (H, H)), "bo": jnp.zeros((1, H), jnp.float32),
        "wd": init(ks[9], (H, H)), "bd": init(ks[10], (1, H)),
        "gamma": 1.0 + init(ks[11], (1, H)), "beta": jnp.zeros((1, H), jnp.float32),
    }

    # _pick_tq chooses tq=8 here -> grid = (B, S//8) = (2, 2): exercises both the
    # query-tile axis and the parallel (megacore-shardable) grid.
    out = ernie_attention(hidden, key_padding_mask, entity, params, num_heads=NH)
    out = jax.block_until_ready(out)

    ref = reference(hidden, key_padding_mask, entity, params, num_heads=NH)
    assert out.shape == (B, S, H)
    # bf16 MXU operands (single rounding per tensor) + exact reciprocal.
    assert jnp.allclose(out, ref, atol=3e-2, rtol=3e-2), float(jnp.max(jnp.abs(out - ref)))

    print("KERNEL_OK")
</pallas_src>

<mosaic_0001>
module attributes {stable_mosaic.version = 11 : i64} {
  func.func @_ernie_attention_kernel(%arg0: i32, %arg1: i32, %arg2: memref<1x8x32xf32, #tpu.memory_space<vmem>>, %arg3: memref<1x4x8x8xbf16, #tpu.memory_space<vmem>>, %arg4: memref<1x4x16x8xbf16, #tpu.memory_space<vmem>>, %arg5: memref<1x4x16x8xbf16, #tpu.memory_space<vmem>>, %arg6: memref<1x1x16xf32, #tpu.memory_space<vmem>>, %arg7: memref<1x8x32xf32, #tpu.memory_space<vmem>>, %arg8: memref<32x32xbf16, #tpu.memory_space<vmem>>, %arg9: memref<1x32xf32, #tpu.memory_space<vmem>>, %arg10: memref<32x32xbf16, #tpu.memory_space<vmem>>, %arg11: memref<1x32xf32, #tpu.memory_space<vmem>>, %arg12: memref<1x32xf32, #tpu.memory_space<vmem>>, %arg13: memref<1x32xf32, #tpu.memory_space<vmem>>, %arg14: memref<1x8x32xf32, #tpu.memory_space<vmem>>, %arg15: memref<8x32xf32, #tpu.memory_space<vmem>>) attributes {dimension_semantics = [#tpu.dimension_semantics<parallel>, #tpu.dimension_semantics<parallel>], iteration_bounds = array<i64: 2, 2>, scalar_prefetch = 0 : i64, scratch_operands = 1 : i64, tpu.core_type = #tpu.core_type<tc>, window_params = [{transform_indices = @transform_0, window_bounds = array<i64: 1, 8, 32>}, {transform_indices = @transform_1, window_bounds = array<i64: 1, 4, 8, 8>}, {transform_indices = @transform_2, window_bounds = array<i64: 1, 4, 16, 8>}, {transform_indices = @transform_3, window_bounds = array<i64: 1, 4, 16, 8>}, {transform_indices = @transform_4, window_bounds = array<i64: 1, 1, 16>}, {transform_indices = @transform_5, window_bounds = array<i64: 1, 8, 32>}, {pipeline_mode = #tpu.pipeline_mode<synchronous>, transform_indices = @transform_6, window_bounds = array<i64: 32, 32>}, {pipeline_mode = #tpu.pipeline_mode<synchronous>, transform_indices = @transform_7, window_bounds = array<i64: 1, 32>}, {pipeline_mode = #tpu.pipeline_mode<synchronous>, transform_indices = @transform_8, window_bounds = array<i64: 32, 32>}, {pipeline_mode = #tpu.pipeline_mode<synchronous>, transform_indices = @transform_9, window_bounds = array<i64: 1, 32>}, {pipeline_mode = #tpu.pipeline_mode<synchronous>, transform_indices = @transform_10, window_bounds = array<i64: 1, 32>}, {pipeline_mode = #tpu.pipeline_mode<synchronous>, transform_indices = @transform_11, window_bounds = array<i64: 1, 32>}, {transform_indices = @transform_12, window_bounds = array<i64: 1, 8, 32>}]} {
    %c0 = arith.constant 0 : index
    %c0_0 = arith.constant 0 : index
    %c0_1 = arith.constant 0 : index
    %c0_2 = arith.constant 0 : index
    %0 = vector.load %arg3[%c0, %c0_0, %c0_1, %c0_2] : memref<1x4x8x8xbf16, #tpu.memory_space<vmem>>, vector<1x4x8x8xbf16>
    %1 = vector.shape_cast %0 : vector<1x4x8x8xbf16> to vector<4x8x8xbf16>
    %c0_3 = arith.constant 0 : index
    %c0_4 = arith.constant 0 : index
    %c0_5 = arith.constant 0 : index
    %c0_6 = arith.constant 0 : index
    %2 = vector.load %arg4[%c0_3, %c0_4, %c0_5, %c0_6] : memref<1x4x16x8xbf16, #tpu.memory_space<vmem>>, vector<1x4x16x8xbf16>
    %3 = vector.shape_cast %2 : vector<1x4x16x8xbf16> to vector<4x16x8xbf16>
    %c0_7 = arith.constant 0 : index
    %c0_8 = arith.constant 0 : index
    %c0_9 = arith.constant 0 : index
    %c0_10 = arith.constant 0 : index
    %4 = vector.load %arg5[%c0_7, %c0_8, %c0_9, %c0_10] : memref<1x4x16x8xbf16, #tpu.memory_space<vmem>>, vector<1x4x16x8xbf16>
    %5 = vector.shape_cast %4 : vector<1x4x16x8xbf16> to vector<4x16x8xbf16>
    %c0_11 = arith.constant 0 : index
    %c0_12 = arith.constant 0 : index
    %c0_13 = arith.constant 0 : index
    %6 = vector.load %arg6[%c0_11, %c0_12, %c0_13] : memref<1x1x16xf32, #tpu.memory_space<vmem>>, vector<1x1x16xf32>
    %7 = vector.shape_cast %6 : vector<1x1x16xf32> to vector<1x16xf32>
    "tpu.trace_start"() <{level = 10 : i32, message = "nqd,nkd->nqk"}> : () -> ()
    %cst = arith.constant dense<0.000000e+00> : vector<4x8x16xf32>
    %8 = tpu.matmul %1, %3, %cst {dimension_numbers = #tpu.dot_dimension_numbers<[2], [2], [1], [1], [0, 0, 0, 1, 1, 1], [0], [0]>} : vector<4x8x8xbf16>, vector<4x16x8xbf16>, vector<4x8x16xf32> -> vector<4x8x16xf32>
    "tpu.trace_stop"() : () -> ()
    %9 = vector.shape_cast %7 : vector<1x16xf32> to vector<1x1x16xf32>
    %10 = vector.broadcast %9 : vector<1x1x16xf32> to vector<4x8x16xf32>
    %11 = arith.addf %8, %10 : vector<4x8x16xf32>
    %cst_14 = arith.constant dense<0xFF800000> : vector<4x8xf32>
    %12 = vector.multi_reduction <maximumf>, %11, %cst_14 [2] : vector<4x8x16xf32> to vector<4x8xf32>
    %13 = vector.shape_cast %12 : vector<4x8xf32> to vector<4x8x1xf32>
    %14 = vector.broadcast %13 : vector<4x8x1xf32> to vector<4x8x16xf32>
    %15 = arith.subf %11, %14 : vector<4x8x16xf32>
    %16 = math.exp %15 : vector<4x8x16xf32>
    %cst_15 = arith.constant dense<0.000000e+00> : vector<4x8xf32>
    %17 = vector.multi_reduction <add>, %16, %cst_15 [2] : vector<4x8x16xf32> to vector<4x8xf32>
    %18 = vector.shape_cast %17 : vector<4x8xf32> to vector<4x8x1xf32>
    %19 = tpu.reciprocal %18 : vector<4x8x1xf32> -> vector<4x8x1xf32>
    %20 = vector.broadcast %19 : vector<4x8x1xf32> to vector<4x8x16xf32>
    %21 = arith.mulf %16, %20 : vector<4x8x16xf32>
    %22 = arith.truncf %21 : vector<4x8x16xf32> to vector<4x8x16xbf16>
    "tpu.trace_start"() <{level = 10 : i32, message = "nqk,nkd->nqd"}> : () -> ()
    %cst_16 = arith.constant dense<0.000000e+00> : vector<4x8x8xf32>
    %23 = tpu.matmul %22, %5, %cst_16 {dimension_numbers = #tpu.dot_dimension_numbers<[2], [1], [1], [2], [0, 0, 0, 1, 1, 2], [0], [0]>} : vector<4x8x16xbf16>, vector<4x16x8xbf16>, vector<4x8x8xf32> -> vector<4x8x8xf32>
    "tpu.trace_stop"() : () -> ()
    %24 = vector.extract_strided_slice %23 {offsets = [0, 0, 0], sizes = [1, 8, 8], strides = [1, 1, 1]} : vector<4x8x8xf32> to vector<1x8x8xf32>
    %25 = vector.shape_cast %24 : vector<1x8x8xf32> to vector<8x8xf32>
    %c0_17 = arith.constant 0 : index
    %c0_18 = arith.constant 0 : index
    %26 = vector.load %arg15[%c0_17, %c0_18] : memref<8x32xf32, #tpu.memory_space<vmem>>, vector<8x8xf32>
    tpu.vector_store %arg15[%c0_17, %c0_18], %25 {strides = array<i32>} : memref<8x32xf32, #tpu.memory_space<vmem>>, vector<8x8xf32>,
    %27 = vector.extract_strided_slice %23 {offsets = [1, 0, 0], sizes = [1, 8, 8], strides = [1, 1, 1]} : vector<4x8x8xf32> to vector<1x8x8xf32>
    %28 = vector.shape_cast %27 : vector<1x8x8xf32> to vector<8x8xf32>
    %c0_19 = arith.constant 0 : index
    %c8 = arith.constant 8 : index
    %29 = vector.load %arg15[%c0_19, %c8] : memref<8x32xf32, #tpu.memory_space<vmem>>, vector<8x8xf32>
    tpu.vector_store %arg15[%c0_19, %c8], %28 {strides = array<i32>} : memref<8x32xf32, #tpu.memory_space<vmem>>, vector<8x8xf32>,
    %30 = vector.extract_strided_slice %23 {offsets = [2, 0, 0], sizes = [1, 8, 8], strides = [1, 1, 1]} : vector<4x8x8xf32> to vector<1x8x8xf32>
    %31 = vector.shape_cast %30 : vector<1x8x8xf32> to vector<8x8xf32>
    %c0_20 = arith.constant 0 : index
    %c16 = arith.constant 16 : index
    %32 = vector.load %arg15[%c0_20, %c16] : memref<8x32xf32, #tpu.memory_space<vmem>>, vector<8x8xf32>
    tpu.vector_store %arg15[%c0_20, %c16], %31 {strides = array<i32>} : memref<8x32xf32, #tpu.memory_space<vmem>>, vector<8x8xf32>,
    %33 = vector.extract_strided_slice %23 {offsets = [3, 0, 0], sizes = [1, 8, 8], strides = [1, 1, 1]} : vector<4x8x8xf32> to vector<1x8x8xf32>
    %34 = vector.shape_cast %33 : vector<1x8x8xf32> to vector<8x8xf32>
    %c0_21 = arith.constant 0 : index
    %c24 = arith.constant 24 : index
    %35 = vector.load %arg15[%c0_21, %c24] : memref<8x32xf32, #tpu.memory_space<vmem>>, vector<8x8xf32>
    tpu.vector_store %arg15[%c0_21, %c24], %34 {strides = array<i32>} : memref<8x32xf32, #tpu.memory_space<vmem>>, vector<8x8xf32>,
    %c0_22 = arith.constant 0 : index
    %c0_23 = arith.constant 0 : index
    %36 = vector.load %arg15[%c0_22, %c0_23] : memref<8x32xf32, #tpu.memory_space<vmem>>, vector<8x32xf32>
    %37 = arith.truncf %36 : vector<8x32xf32> to vector<8x32xbf16>
    %c0_24 = arith.constant 0 : index
    %c0_25 = arith.constant 0 : index
    %38 = vector.load %arg8[%c0_24, %c0_25] : memref<32x32xbf16, #tpu.memory_space<vmem>>, vector<32x32xbf16>
    %cst_26 = arith.constant dense<0.000000e+00> : vector<8x32xf32>
    %39 = tpu.matmul %37, %38, %cst_26 {dimension_numbers = #tpu.dot_dimension_numbers<[1], [0], [0], [1], [0, 0, 1, 1], [], []>} : vector<8x32xbf16>, vector<32x32xbf16>, vector<8x32xf32> -> vector<8x32xf32>
    %c0_27 = arith.constant 0 : index
    %c0_28 = arith.constant 0 : index
    %40 = vector.load %arg9[%c0_27, %c0_28] : memref<1x32xf32, #tpu.memory_space<vmem>>, vector<1x32xf32>
    %41 = vector.broadcast %40 : vector<1x32xf32> to vector<8x32xf32>
    %42 = arith.addf %39, %41 : vector<8x32xf32>
    %c0_29 = arith.constant 0 : index
    %c0_30 = arith.constant 0 : index
    %c0_31 = arith.constant 0 : index
    %43 = vector.load %arg7[%c0_29, %c0_30, %c0_31] : memref<1x8x32xf32, #tpu.memory_space<vmem>>, vector<1x8x32xf32>
    %44 = vector.shape_cast %43 : vector<1x8x32xf32> to vector<8x32xf32>
    %45 = arith.addf %42, %44 : vector<8x32xf32>
    %46 = arith.truncf %45 : vector<8x32xf32> to vector<8x32xbf16>
    %c0_32 = arith.constant 0 : index
    %c0_33 = arith.constant 0 : index
    %47 = vector.load %arg10[%c0_32, %c0_33] : memref<32x32xbf16, #tpu.memory_space<vmem>>, vector<32x32xbf16>
    %cst_34 = arith.constant dense<0.000000e+00> : vector<8x32xf32>
    %48 = tpu.matmul %46, %47, %cst_34 {dimension_numbers = #tpu.dot_dimension_numbers<[1], [0], [0], [1], [0, 0, 1, 1], [], []>} : vector<8x32xbf16>, vector<32x32xbf16>, vector<8x32xf32> -> vector<8x32xf32>
    %c0_35 = arith.constant 0 : index
    %c0_36 = arith.constant 0 : index
    %49 = vector.load %arg11[%c0_35, %c0_36] : memref<1x32xf32, #tpu.memory_space<vmem>>, vector<1x32xf32>
    %50 = vector.broadcast %49 : vector<1x32xf32> to vector<8x32xf32>
    %51 = arith.addf %48, %50 : vector<8x32xf32>
    %c0_37 = arith.constant 0 : index
    %c0_38 = arith.constant 0 : index
    %c0_39 = arith.constant 0 : index
    %52 = vector.load %arg2[%c0_37, %c0_38, %c0_39] : memref<1x8x32xf32, #tpu.memory_space<vmem>>, vector<1x8x32xf32>
    %53 = vector.shape_cast %52 : vector<1x8x32xf32> to vector<8x32xf32>
    %54 = arith.addf %51, %53 : vector<8x32xf32>
    %cst_40 = arith.constant dense<0.000000e+00> : vector<8xf32>
    %55 = vector.multi_reduction <add>, %54, %cst_40 [1] : vector<8x32xf32> to vector<8xf32>
    %56 = vector.shape_cast %55 : vector<8xf32> to vector<8x1xf32>
    %cst_41 = arith.constant 3.200000e+01 : f32
    %57 = vector.broadcast %cst_41 : f32 to vector<8x1xf32>
    %58 = arith.divf %56, %57 : vector<8x1xf32>
    %59 = vector.broadcast %58 : vector<8x1xf32> to vector<8x32xf32>
    %60 = arith.subf %54, %59 : vector<8x32xf32>
    %61 = arith.mulf %60, %60 : vector<8x32xf32>
    %cst_42 = arith.constant dense<0.000000e+00> : vector<8xf32>
    %62 = vector.multi_reduction <add>, %61, %cst_42 [1] : vector<8x32xf32> to vector<8xf32>
    %63 = vector.shape_cast %62 : vector<8xf32> to vector<8x1xf32>
    %cst_43 = arith.constant 3.200000e+01 : f32
    %64 = vector.broadcast %cst_43 : f32 to vector<8x1xf32>
    %65 = arith.divf %63, %64 : vector<8x1xf32>
    %66 = vector.broadcast %58 : vector<8x1xf32> to vector<8x32xf32>
    %67 = arith.subf %54, %66 : vector<8x32xf32>
    %cst_44 = arith.constant 9.99999996E-13 : f32
    %68 = vector.broadcast %cst_44 : f32 to vector<8x1xf32>
    %69 = arith.addf %65, %68 : vector<8x1xf32>
    %70 = math.rsqrt %69 : vector<8x1xf32>
    %71 = vector.broadcast %70 : vector<8x1xf32> to vector<8x32xf32>
    %72 = arith.mulf %67, %71 : vector<8x32xf32>
    %c0_45 = arith.constant 0 : index
    %c0_46 = arith.constant 0 : index
    %73 = vector.load %arg12[%c0_45, %c0_46] : memref<1x32xf32, #tpu.memory_space<vmem>>, vector<1x32xf32>
    %74 = vector.broadcast %73 : vector<1x32xf32> to vector<8x32xf32>
    %75 = arith.mulf %72, %74 : vector<8x32xf32>
    %c0_47 = arith.constant 0 : index
    %c0_48 = arith.constant 0 : index
    %76 = vector.load %arg13[%c0_47, %c0_48] : memref<1x32xf32, #tpu.memory_space<vmem>>, vector<1x32xf32>
    %77 = vector.broadcast %76 : vector<1x32xf32> to vector<8x32xf32>
    %78 = arith.addf %75, %77 : vector<8x32xf32>
    %c0_49 = arith.constant 0 : index
    %c0_50 = arith.constant 0 : index
    %c0_51 = arith.constant 0 : index
    %79 = vector.load %arg14[%c0_49, %c0_50, %c0_51] : memref<1x8x32xf32, #tpu.memory_space<vmem>>, vector<1x8x32xf32>
    %80 = vector.shape_cast %79 : vector<1x8x32xf32> to vector<8x32xf32>
    %81 = vector.shape_cast %78 : vector<8x32xf32> to vector<1x8x32xf32>
    tpu.vector_store %arg14[%c0_49, %c0_50, %c0_51], %81 {strides = array<i32>} : memref<1x8x32xf32, #tpu.memory_space<vmem>>, vector<1x8x32xf32>,
    return
  }
  func.func @transform_0(%arg0: i32, %arg1: i32) -> (i32, i32, i32) {
    %c0_i32 = arith.constant 0 : i32
    %c0_i32_0 = arith.constant 0 : i32
    return %arg0, %arg1, %c0_i32 : i32, i32, i32
  }
  func.func @transform_1(%arg0: i32, %arg1: i32) -> (i32, i32, i32, i32) {
    %c0_i32 = arith.constant 0 : i32
    %c0_i32_0 = arith.constant 0 : i32
    %c0_i32_1 = arith.constant 0 : i32
    return %arg0, %c0_i32, %arg1, %c0_i32_0 : i32, i32, i32, i32
  }
  func.func @transform_2(%arg0: i32, %arg1: i32) -> (i32, i32, i32, i32) {
    %c0_i32 = arith.constant 0 : i32
    %c0_i32_0 = arith.constant 0 : i32
    %c0_i32_1 = arith.constant 0 : i32
    %c0_i32_2 = arith.constant 0 : i32
    return %arg0, %c0_i32, %c0_i32_0, %c0_i32_1 : i32, i32, i32, i32
  }
  func.func @transform_3(%arg0: i32, %arg1: i32) -> (i32, i32, i32, i32) {
    %c0_i32 = arith.constant 0 : i32
    %c0_i32_0 = arith.constant 0 : i32
    %c0_i32_1 = arith.constant 0 : i32
    %c0_i32_2 = arith.constant 0 : i32
    return %arg0, %c0_i32, %c0_i32_0, %c0_i32_1 : i32, i32, i32, i32
  }
  func.func @transform_4(%arg0: i32, %arg1: i32) -> (i32, i32, i32) {
    %c0_i32 = arith.constant 0 : i32
    %c0_i32_0 = arith.constant 0 : i32
    %c0_i32_1 = arith.constant 0 : i32
    return %arg0, %c0_i32, %c0_i32_0 : i32, i32, i32
  }
  func.func @transform_5(%arg0: i32, %arg1: i32) -> (i32, i32, i32) {
    %c0_i32 = arith.constant 0 : i32
    %c0_i32_0 = arith.constant 0 : i32
    return %arg0, %arg1, %c0_i32 : i32, i32, i32
  }
  func.func @transform_6(%arg0: i32, %arg1: i32) -> (i32, i32) {
    %c0_i32 = arith.constant 0 : i32
    %c0_i32_0 = arith.constant 0 : i32
    %c0_i32_1 = arith.constant 0 : i32
    return %c0_i32, %c0_i32_0 : i32, i32
  }
  func.func @transform_7(%arg0: i32, %arg1: i32) -> (i32, i32) {
    %c0_i32 = arith.constant 0 : i32
    %c0_i32_0 = arith.constant 0 : i32
    %c0_i32_1 = arith.constant 0 : i32
    return %c0_i32, %c0_i32_0 : i32, i32
  }
  func.func @transform_8(%arg0: i32, %arg1: i32) -> (i32, i32) {
    %c0_i32 = arith.constant 0 : i32
    %c0_i32_0 = arith.constant 0 : i32
    %c0_i32_1 = arith.constant 0 : i32
    return %c0_i32, %c0_i32_0 : i32, i32
  }
  func.func @transform_9(%arg0: i32, %arg1: i32) -> (i32, i32) {
    %c0_i32 = arith.constant 0 : i32
    %c0_i32_0 = arith.constant 0 : i32
    %c0_i32_1 = arith.constant 0 : i32
    return %c0_i32, %c0_i32_0 : i32, i32
  }
  func.func @transform_10(%arg0: i32, %arg1: i32) -> (i32, i32) {
    %c0_i32 = arith.constant 0 : i32
    %c0_i32_0 = arith.constant 0 : i32
    %c0_i32_1 = arith.constant 0 : i32
    return %c0_i32, %c0_i32_0 : i32, i32
  }
  func.func @transform_11(%arg0: i32, %arg1: i32) -> (i32, i32) {
    %c0_i32 = arith.constant 0 : i32
    %c0_i32_0 = arith.constant 0 : i32
    %c0_i32_1 = arith.constant 0 : i32
    return %c0_i32, %c0_i32_0 : i32, i32
  }
  func.func @transform_12(%arg0: i32, %arg1: i32) -> (i32, i32, i32) {
    %c0_i32 = arith.constant 0 : i32
    %c0_i32_0 = arith.constant 0 : i32
    return %arg0, %arg1, %c0_i32 : i32, i32, i32
  }
}

</mosaic_0001>

<bundles_post_ra>
// kernel: tpu_custom_call.1
= control target key start
LH: loop header
LB: loop body
LE: loop exit
PB: predicated region body
PF: predicated region fallthrough
CT: control target
= control target key end

     0   :  { %s1803_s0 = inlined_call_operand.vmem [shape: f32[2,16,32], index: 0, kind: input, shape index: {}]   ;;  %s1804_s1 = inlined_call_operand.vmem [shape: bf16[2,4,16,8], index: 1, kind: input, shape index: {}]   ;;  %s1805_s2 = inlined_call_operand.vmem [shape: bf16[2,4,16,8], index: 2, kind: input, shape index: {}]   ;;  %s1806_s3 = inlined_call_operand.vmem [shape: bf16[2,4,16,8], index: 3, kind: input, shape index: {}]   ;;  %s1807_s4 = inlined_call_operand.vmem [shape: f32[2,1,16], index: 4, kind: input, shape index: {}]   ;;  %s1808_s5 = inlined_call_operand.vmem [shape: f32[2,16,32], index: 5, kind: input, shape index: {}]   ;;  %s1809_s6 = inlined_call_operand.vmem [shape: bf16[32,32], index: 6, kind: input, shape index: {}]   ;;  %s1810_s7 = inlined_call_operand.vmem [shape: f32[1,32], index: 7, kind: input, shape index: {}]   ;;  %s1811_s8 = inlined_call_operand.vmem [shape: bf16[32,32], index: 8, kind: input, shape index: {}]   ;;  %s1812_s9 = inlined_call_operand.vmem [shape: f32[1,32], index: 9, kind: input, shape index: {}]   ;;  %s1813_s10 = inlined_call_operand.vmem [shape: f32[1,32], index: 10, kind: input, shape index: {}]   ;;  %s1814_s11 = inlined_call_operand.vmem [shape: f32[1,32], index: 11, kind: input, shape index: {}]   ;;  %s1815_s12 = inlined_call_operand.hbm [shape: f32[2,16,32], index: 12, kind: output, shape index: {}]  }
   0x1   :  { %1822 = sst [smem:[#allocation12_spill]] %s1803_s0 }
   0x2   :  { %1823 = sst [smem:[#allocation13_spill]] %s1804_s1 }
   0x3   :  { %1824 = sst [smem:[#allocation14_spill]] %s1814_s11 }
   0x4   :  { %17 = vsyncpa [#allocation5], 0 }
   0x5   :  { %19 = vsyncpa [#allocation5 + $0x1], 0  ;;  %s1578_s21 = smov 0   ;;  %s1580_s22 = smov 0  }
   0x6   :  { %s1582_s23 = smov 0   ;;  %s1584_s24 = smov 0  }
   0x7   :  { %s1586_s25 = smov 0   ;;  %s1588_s26 = smov 0  }
   0x8   :  { %s1590_s27 = smov 0   ;;  %s1592_s28 = smov 0  }
   0x9 LB: > { %1825 = sst [smem:[#allocation7_spill]] %s1479_s21  ;;  %s1218_s29 = sadd.s32 4294967295, %s1507_s28   ;;  %s1507_s28 = sphi %s1592_s28, %s25_s28   ;;  %s1503_s27 = sphi %s1590_s27, %s1847_s27   ;;  %s1499_s26 = sphi %s1588_s26, %s1846_s26   ;;  %s1495_s25 = sphi %s1586_s25, %s1845_s25   ;;  %s1491_s24 = sphi %s1584_s24, %s1844_s24   ;;  %s1487_s23 = sphi %s1582_s23, %s1843_s23   ;;  %s1483_s22 = sphi %s1580_s22, %s1842_s22   ;;  %s1479_s21 = sphi %s1578_s21, %s1841_s21  }
   0xa   : > { %s1219_s30 = sadd.s32 4294967294, %s1507_s28   ;;  %s34_s13 = sadd.s32 1, %s1499_s26 }
   0xb   : > { %p35_p0 = scmp.ge.s32.totalorder %s34_s13, 2  ;;  %s37_s14 = sadd.s32 1, %s1503_s27 }
   0xc   : > { %p81_p1 = scmp.ne.s32.totalorder %s1487_s23, %s1483_s22  ;;  %p82_p2 = scmp.eq.s32.totalorder %s1507_s28, 0 }
   0xd   : > { %s1849_s13 = smov (%p35_p0, %s34_s13), 0  ;;  %s1851_s14 = smov (!%p35_p0, %s37_s14), %s1503_s27 }
   0xe   : > { %1826 = sst [smem:[#allocation8_spill]] %s1849_s13  ;;  %s70_s15 = ssub.s32 %s1499_s26, %s1849_s13 }
   0xf   : > { %p1630_p3 = por %p82_p2, %p81_p1  ;;  %p39_p4 = scmp.ge.s32.totalorder %s1851_s14, 2 }
  0x10   : > { %p345_p5 = scmp.eq.s32.totalorder %s1218_s29, 3  ;;  %p350_p6 = scmp.ne.s32.totalorder %s1483_s22, %s1479_s21 }
  0x11   : > { %p351_p7 = scmp.eq.s32.totalorder %s1219_s30, 3  ;;  %s1853_s14 = smov (%p39_p4, %s1851_s14), 0 }
  0x12   : > { %1828 = sst [smem:[#allocation9_spill]] %s1853_s14  ;;  %p1638_p8 = por %p345_p5, %p81_p1 }
  0x13   : > { %p1642_p9 = por %p351_p7, %p350_p6  ;;  %s69_s19 = ssub.s32 %s1503_s27, %s1853_s14 }
  0x14   : > { %s1829_s17 = scalar_select %p1638_p8, 1, 0 }
  0x15   : > { %s1831_s18 = scalar_select %p1642_p9, 1, 0 }
  0x16   : > { %1830 = sst [smem:[#allocation10_spill]] %s1829_s17  ;;  %s71_s20 = sor.u32 %s70_s15, %s69_s19 }
  0x17   : > { %1832 = sst [smem:[#allocation11_spill]] %s1831_s18  ;;  %s74_s13 = sadd.s32 1, %s1487_s23 }
  0x18   : > { %p72_p10 = scmp.eq.s32.totalorder %s71_s20, 0  ;;  %p1221_p11 = scmp.ge.s32.totalorder %s1507_s28, 4 }
  0x1a   : > { %s1650_s11 = scalar_select %p72_p10, %s1487_s23, %s74_s13  }
  0x1b   : > { %385 = sbr.rel (%p1221_p11) target bundleno = 46 (0x2e), region = 40 }
  0x20   : > { %399 = sbr.rel (!%p1630_p3) target bundleno = 46 (0x2e), region = 48  ;;  %s401_s29 = sand.u32 (%p1630_p3), 1, %s1487_s23  }
  0x21   : > { %s1223_s30 = sshll.u32 (%p1630_p3), %s1503_s27, 3  ;;  %s1222_s21 = sshll.u32 (%p1630_p3), %s401_s29, 4 }
  0x22   : > { %s405_s17 = sadd.s32 (%p1630_p3), %s1499_s26, %s1223_s30  ;;  %s1833_s1 = sld [smem:[#allocation13_spill]] (%p1630_p3) }
  0x23   : > { %s1224_s18 = sshll.u32 (%p1630_p3), %s405_s17, 2  ;;  %s403_s13 = scalar_lea.vmem (%p1630_p3), [#allocation3], %s1222_s21 }
  0x28   : > { %s407_s19 = scalar_lea.vmem %s1833_s1, %s1224_s18 }
  0x29   : > { %v424_v0 = vld [vmem:[%s407_s19] sm:$0xf]  ;;  %v426_v1 = vld [vmem:[%s407_s19 + $0x8] sm:$0xf]  ;;  %v428_v2 = vld [vmem:[%s407_s19 + $0x10] sm:$0xf] }
  0x2a   : > { %425 = vst [vmem:[%s403_s13] sm:$0xf] %v424_v0  ;;  %v430_v3 = vld [vmem:[%s407_s19 + $0x18] sm:$0xf] }
  0x2b   : > { %427 = vst [vmem:[%s403_s13 + $0x4] sm:$0xf] %v426_v1 }
  0x2c   : > { %429 = vst [vmem:[%s403_s13 + $0x8] sm:$0xf] %v428_v2 }
  0x2d   : > { %431 = vst [vmem:[%s403_s13 + $0xc] sm:$0xf] %v430_v3 }
  0x2e PF: > { %p1225_p12 = scmp.ge.s32.totalorder %s1507_s28, 1  ;;  %p495_p13 = scmp.lt.s32.totalorder %s1507_s28, 5 }
  0x30   : > { %p496_p0 = pnand %p1225_p12, %p495_p13 }
  0x31   : > { %p572_p1 = scmp.lt.s32.totalorder (!%p496_p0), %s1495_s25, 1  ;;  %s1668_s21 = sand.u32 (!%p496_p0), 1, %s1483_s22  }
  0x32   : > { %499 = sbr.rel (%p496_p0) target bundleno = 1266 (0x4f2), region = 105  ;;  %s1226_s19 = sshll.u32 (!%p496_p0), %s1668_s21, 4 }
  0x33   : > { %s504_s13 = scalar_lea.vmem (!%p496_p0), [#allocation3], %s1226_s19  ;;  %s1510_s29 = smov (!%p496_p0), 16  }
  0x34   : > { %s1511_s30 = smov (!%p496_p0), 24   ;;  %p574_p2 = scmp.lt.s32.totalorder (!%p496_p0), %s1491_s24, 1 }
  0x35   : > { %s1834_s0 = sld [smem:[#allocation12_spill]] (!%p496_p0)  ;;  %s1295_s1 = sshll.u32 (!%p496_p0), %s1495_s25, 1 }
  0x36   : > { %s1227_s17 = sshll.u32 (!%p496_p0), %s1668_s21, 3 }
  0x37   : > { %s1665_s14 = scalar_select %p572_p1, %s1495_s25, 1  ;;  %vm631_vm0 = vcmask 64512   ;;  %v603_v12 = vld [vmem:[%s504_s13 + $0x4] sm:$0xf]  ;;  %v604_v13 = vld [vmem:[%s504_s13 + $0x8] sm:$0xf] }
  0x38   : > { %v605_v14 = vld [vmem:[%s504_s13 + $0xc] sm:$0xf]  ;;  %v602_v15 = vld [vmem:[%s504_s13] sm:$0xf]  ;;  %vm723_vm1 = vcmask 130048  }
  0x39   : > { %s1299_s16 = sshll.u32 %s1665_s14, 5  ;;  %s592_s20 = scalar_lea.vmem %s1807_s4, %s1665_s14 }
  0x3a   : > { %s584_s15 = scalar_lea.vmem %s1805_s2, %s1299_s16  ;;  %v1388_v16 = vld [vmem:[%s592_s20] ss:$0 sm:$0xff]  ;;  %s589_s20 = scalar_lea.vmem %s1806_s3, %s1299_s16 }
  0x3b   : > { %v1302_v4 = vld [vmem:[%s584_s15 + $0x8] sm:$0xff]  ;;  %v1303_v5 = vld [vmem:[%s584_s15 + $0x10] sm:$0xff]  ;;  %v1304_v6 = vld [vmem:[%s584_s15 + $0x18] sm:$0xff]  ;;  %s1509_s16 = smov 8  }
  0x3c   : > { %v1301_v7 = vld [vmem:[%s584_s15] sm:$0xff]  ;;  %v660_v8 = vsel %vm631_vm0, %v1302_v4, 0  ;;  %v684_v9 = vsel %vm631_vm0, %v1303_v5, 0  ;;  %v708_v10 = vsel %vm631_vm0, %v1304_v6, 0  ;;  %v1306_v53 = vld [vmem:[%s589_s20 + $0x8] sm:$0xff]  ;;  %v1307_v54 = vld [vmem:[%s589_s20 + $0x10] sm:$0xff] }
  0x3d   : > { %669 = vmatpush.bf16.xpose.msra.mxu1 %v660_v8  ;;  %693 = vmatpush.bf16.xpose.msra.mxu2 %v684_v9  ;;  %v636_v11 = vsel %vm631_vm0, %v1301_v7, 0  ;;  %v1305_v55 = vld [vmem:[%s589_s20] sm:$0xff]  ;;  %v1308_v56 = vld [vmem:[%s589_s20 + $0x18] sm:$0xff]  ;;  %s1228_s15 = sshll.u32 %s1665_s14, 1 }
  0x3e   : > { %717 = vmatpush.bf16.xpose.msra.mxu3 %v708_v10  ;;  %645 = vmatpush.bf16.xpose.msra.mxu0 %v636_v11 }
  0x44   : > { %1245 = vmatmul.msk.bf16.vlgmr.msra.gmra.mxu1 %vm631_vm0, %v603_v12  ;;  %1250 = vmatmul.msk.bf16.vlgmr.msra.gmra.mxu2 %vm631_vm0, %v604_v13 }
  0x45   : > { %1255 = vmatmul.msk.bf16.vlgmr.msra.gmra.mxu3 %vm631_vm0, %v605_v14  ;;  %1240 = vmatmul.msk.bf16.vlgmr.msra.gmra.mxu0 %vm631_vm0, %v602_v15 }
  0x46   : > { %862 = vmatpush.bf16.msrb.mxu1 %v1306_v53  ;;  %884 = vmatpush.bf16.msrb.mxu2 %v1307_v54  ;;  %v1310_v54 = vld [vmem:[%s1809_s6 + $0x8] sm:$0xff] }
  0x47   : > { %840 = vmatpush.bf16.msrb.mxu0 %v1305_v55  ;;  %906 = vmatpush.bf16.msrb.mxu3 %v1308_v56  ;;  %v1309_v55 = vld [vmem:[%s1809_s6] sm:$0xff]  ;;  %v1312_v56 = vld [vmem:[%s1811_s8 + $0x8] sm:$0xff] }
  0x4a   : > { %1002 = vmatpush.bf16.msra.mxu1 %v1312_v56 }
  0x4b   : > { %963 = vmatpush.bf16.msra.mxu0 %v1310_v54 }
  0x4f   : > { %964 = vmatpush.bf16.msra.mxu0 %v1309_v55 }
  0xc1   : > { %v671_v17 = vpop.f32.mrf.mxu1 }
  0xc2   : > { %v672_v18 = vadd.f32 %v1388_v16, %v671_v17  ;;  %v647_v19 = vpop.f32.mrf.mxu0 }
  0xc3   : > { %v648_v21 = vadd.f32 %v1388_v16, %v647_v19 }
  0xc4   : > { %v727_v20 = vsel %vm723_vm1, %v672_v18, -inf }
  0xc5   : > { %728 = vmax.xlane.f32.xlu1 %v727_v20  ;;  %v724_v27 = vsel %vm723_vm1, %v648_v21, -inf }
  0xc7   : > { %v695_v22 = vpop.f32.mrf.mxu2 }
  0xc8   : > { %v696_v23 = vadd.f32 %v1388_v16, %v695_v22  ;;  %v719_v24 = vpop.f32.mrf.mxu3 }
  0xc9   : > { %v673_v25 = vpop.f32.mrf.mxu1  ;;  %v720_v29 = vadd.f32 %v1388_v16, %v719_v24 }
  0xca   : > { %v730_v26 = vsel %vm723_vm1, %v696_v23, -inf  ;;  %v649_v28 = vpop.f32.mrf.mxu0 }
  0xcb   : > { %731 = vmax.xlane.f32.xlu0 %v730_v26  ;;  %v733_v32 = vsel %vm723_vm1, %v720_v29, -inf }
  0xcd   : > { %725 = vmax.xlane.f32.xlu1 %v724_v27 }
  0xcf   : > { %v697_v30 = vpop.f32.mrf.mxu2 }
  0xd0   : > { %v721_v31 = vpop.f32.mrf.mxu3 }
  0xd3   : > { %734 = vmax.xlane.f32.xlu0 %v733_v32 }
 0x138   : > { %v729_v33 = vpop.xlane.xlu1 %728 }
 0x139   : > { %v737_v34 = vsub.f32 %v672_v18, %v729_v33 }
 0x13b   : > { %v742_v35 = vmul.f32 1.442695, %v737_v34 }
 0x13d   : > { %1393 = vpow2.f32 %v742_v35 }
 0x13e   : > { %v732_v36 = vpop.xlane.xlu0 %731 }
 0x13f   : > { %v738_v37 = vsub.f32 %v696_v23, %v732_v36 }
 0x140   : > { %v726_v38 = vpop.xlane.xlu1 %725 }
 0x141   : > { %v744_v39 = vmul.f32 1.442695, %v738_v37  ;;  %v736_v40 = vsub.f32 %v648_v21, %v726_v38 }
 0x143   : > { %v1394_v41 = vpop.eup %1393  ;;  %1395 = vpow2.f32 %v744_v39  ;;  %v740_v42 = vmul.f32 1.442695, %v736_v40 }
 0x144   : > { %v751_v43 = vsel %vm723_vm1, %v1394_v41, 0.0 }
 0x145   : > { %1397 = vpow2.f32 %v740_v42  ;;  %752 = vadd.xlane.f32.xlu0 %v751_v43 }
 0x146   : > { %v735_v44 = vpop.xlane.xlu0 %734 }
 0x147   : > { %v739_v45 = vsub.f32 %v720_v29, %v735_v44 }
 0x149   : > { %v1694_v46 = vpop.eup %1395  ;;  %v746_v47 = vmul.f32 1.442695, %v739_v45 }
 0x14a   : > { %v754_v48 = vsel %vm723_vm1, %v1694_v46, 0.0 }
 0x14b   : > { %v1698_v49 = vpop.eup %1397  ;;  %1399 = vpow2.f32 %v746_v47  ;;  %755 = vadd.xlane.f32.xlu2 %v754_v48 }
 0x14c   : > { %v748_v50 = vsel %vm723_vm1, %v1698_v49, 0.0 }
 0x14d   : > { %749 = vadd.xlane.f32.xlu1 %v748_v50 }
 0x151   : > { %v1702_v51 = vpop.eup %1399 }
 0x152   : > { %v757_v52 = vsel %vm723_vm1, %v1702_v51, 0.0 }
 0x153   : > { %758 = vadd.xlane.f32.xlu2 %v757_v52 }
 0x1b8   : > { %v753_v57 = vpop.xlane.xlu0 %752 }
 0x1b9   : > { %1401 = vrcp.f32 %v753_v57  ;;  %v785_v63 = vand.u32 2147483648, %v753_v57  ;;  %v783_v1 = vand.u32 2147483647, %v753_v57  ;;  %vm779_vm3 = vweird.f32 %v753_v57 }
 0x1bb   : > { %v786_v7 = vor.u32 1.1754944e-38, %v785_v63  ;;  %vm784_vm5 = vcmp.eq.f32.partialorder %v783_v1, 8.507059e+37 }
 0x1be   : > { %v756_v58 = vpop.xlane.xlu2 %755 }
 0x1bf   : > { %v1402_v59 = vpop.eup %1401  ;;  %1403 = vrcp.f32 %v756_v58  ;;  %v797_v11 = vand.u32 2147483647, %v756_v58  ;;  %v799_v12 = vand.u32 2147483648, %v756_v58  ;;  %vm793_vm7 = vweird.f32 %v756_v58 }
 0x1c0   : > { %v775_v60 = vmul.f32 %v1402_v59, %v753_v57  ;;  %v750_v61 = vpop.xlane.xlu1 %749  ;;  %vm780_vm2 = vweird.f32 %v1402_v59  ;;  %v1311_v57 = vld [vmem:[%s1811_s8] sm:$0xff] }
 0x1c1   : > { %1405 = vrcp.f32 %v750_v61  ;;  %vm781_vm4 = vmor %vm779_vm3, %vm780_vm2  ;;  %vm765_vm8 = vweird.f32 %v750_v61  ;;  %v769_v17 = vand.u32 2147483647, %v750_v61  ;;  %v771_v18 = vand.u32 2147483648, %v750_v61  ;;  %1003 = vmatpush.bf16.msra.mxu1 %v1311_v57 }
 0x1c2   : > { %v776_v62 = vsub.f32 1.0, %v775_v60  ;;  %v800_v23 = vor.u32 1.1754944e-38, %v799_v12  ;;  %vm798_vm11 = vcmp.eq.f32.partialorder %v797_v11, 8.507059e+37  ;;  %v1512_v12 = vmov 32.0  }
 0x1c3   : > { %v772_v27 = vor.u32 1.1754944e-38, %v771_v18  ;;  %vm770_vm13 = vcmp.eq.f32.partialorder %v769_v17, 8.507059e+37 }
 0x1c4   : > { %v777_v0 = vmul.f32 %v1402_v59, %v776_v62  ;;  %v1389_v62 = vld [vmem:[%s1810_s7] ss:$0 sm:$0xff] }
 0x1c5   : > { %v1404_v2 = vpop.eup %1403 }
 0x1c6   : > { %v778_v3 = vadd.f32 %v1402_v59, %v777_v0  ;;  %v789_v4 = vmul.f32 %v1404_v2, %v756_v58  ;;  %v759_v5 = vpop.xlane.xlu2 %758  ;;  %vm794_vm6 = vweird.f32 %v1404_v2 }
 0x1c7   : > { %v1406_v6 = vpop.eup %1405  ;;  %1407 = vrcp.f32 %v759_v5  ;;  %vm795_vm10 = vmor %vm793_vm7, %vm794_vm6  ;;  %v811_v32 = vand.u32 2147483647, %v759_v5  ;;  %v813_v33 = vand.u32 2147483648, %v759_v5  ;;  %vm807_vm15 = vweird.f32 %v759_v5 }
 0x1c8   : > { %v790_v8 = vsub.f32 1.0, %v789_v4  ;;  %v761_v9 = vmul.f32 %v1406_v6, %v750_v61  ;;  %v782_v10 = vsel %vm781_vm4, %v1402_v59, %v778_v3  ;;  %vm766_vm9 = vweird.f32 %v1406_v6 }
 0x1c9   : > { %v787_v13 = vsel %vm784_vm5, %v786_v7, %v782_v10  ;;  %vm767_vm12 = vmor %vm765_vm8, %vm766_vm9  ;;  %v814_v40 = vor.u32 1.1754944e-38, %v813_v33  ;;  %vm812_vm3 = vcmp.eq.f32.partialorder %v811_v32, 8.507059e+37  ;;  %vm917_vm4 = vcmask 130112   ;;  %v1391_v33 = vld [vmem:[%s1813_s10] ss:$0 sm:$0xff] }
 0x1ca   : > { %v791_v14 = vmul.f32 %v1404_v2, %v790_v8  ;;  %v762_v15 = vsub.f32 1.0, %v761_v9  ;;  %v817_v16 = vmul.f32 %v1394_v41, %v787_v13  ;;  %vm953_vm5 = vcmask 261120  }
 0x1cb   : > { %1409 = vrcp.f32 %v1512_v12 }
 0x1cc   : > { %v792_v19 = vadd.f32 %v1404_v2, %v791_v14  ;;  %v763_v20 = vmul.f32 %v1406_v6, %v762_v15  ;;  %v821_v21 = vpack.c.bf16 %v817_v16, %v817_v16 }
 0x1cd   : > { %v1408_v22 = vpop.eup %1407 }
 0x1ce   : > { %v764_v24 = vadd.f32 %v1406_v6, %v763_v20  ;;  %v803_v25 = vmul.f32 %v1408_v22, %v759_v5  ;;  %1265 = vmatmul.msk.bf16.vlgmr.msrb.gmra.mxu1 %vm723_vm1, %v821_v21  ;;  %v796_v26 = vsel %vm795_vm10, %v1404_v2, %v792_v19  ;;  %vm808_vm14 = vweird.f32 %v1408_v22  ;;  %v1390_v5 = vld [vmem:[%s1812_s9] ss:$0 sm:$0xff] }
 0x1cf   : > { %v801_v28 = vsel %vm798_vm11, %v800_v23, %v796_v26  ;;  %vm809_vm2 = vmor %vm807_vm15, %vm808_vm14 }
 0x1d0   : > { %v804_v29 = vsub.f32 1.0, %v803_v25  ;;  %v818_v30 = vmul.f32 %v1694_v46, %v801_v28  ;;  %v768_v31 = vsel %vm767_vm12, %v1406_v6, %v764_v24 }
 0x1d1   : > { %v773_v34 = vsel %vm770_vm13, %v772_v27, %v768_v31  ;;  %v1410_v13 = vpop.eup %1409 }
 0x1d2   : > { %v805_v35 = vmul.f32 %v1408_v22, %v804_v29  ;;  %v822_v36 = vpack.c.bf16 %v818_v30, %v818_v30  ;;  %v816_v37 = vmul.f32 %v1698_v49, %v773_v34  ;;  %v1015_v14 = vmul.f32 32.0, %v1410_v13 }
 0x1d3   : > { %vm1019_vm6 = vweird.f32 %v1410_v13 }
 0x1d4   : > { %v806_v38 = vadd.f32 %v1408_v22, %v805_v35  ;;  %1270 = vmatmul.msk.bf16.vlgmr.msrb.gmra.mxu2 %vm723_vm1, %v822_v36  ;;  %v820_v39 = vpack.c.bf16 %v816_v37, %v816_v37  ;;  %v1016_v15 = vsub.f32 1.0, %v1015_v14 }
 0x1d6   : > { %1260 = vmatmul.msk.bf16.vlgmr.msrb.gmra.mxu0 %vm723_vm1, %v820_v39  ;;  %v810_v41 = vsel %vm809_vm2, %v1408_v22, %v806_v38  ;;  %v1017_v16 = vmul.f32 %v1410_v13, %v1016_v15 }
 0x1d7   : > { %v815_v42 = vsel %vm812_vm3, %v814_v40, %v810_v41 }
 0x1d8   : > { %v819_v43 = vmul.f32 %v1702_v51, %v815_v42  ;;  %v1018_v17 = vadd.f32 %v1410_v13, %v1017_v16 }
 0x1da   : > { %v823_v44 = vpack.c.bf16 %v819_v43, %v819_v43  ;;  %v1020_v18 = vsel %vm1019_vm6, %v1410_v13, %v1018_v17 }
 0x1dc   : > { %1275 = vmatmul.msk.bf16.vlgmr.msrb.gmra.mxu3 %vm723_vm1, %v823_v44  ;;  %vm929_vm1 = vcmask 261312  }
 0x24b   : > { %v864_v45 = vpop.f32.mrf.mxu1 }
 0x24c   : > { %914 = vrot.lane.b32.xlu2 %v864_v45, %s1509_s16 }
 0x253   : > { %v842_v46 = vpop.f32.mrf.mxu0  ;;  %v866_v47 = vpop.f32.mrf.mxu1 }
 0x254   : > { %912 = vst.msk [vmem:[#allocation2] sm:$0xff] %vm631_vm0, %v842_v46  ;;  %vm923_vm0 = vcmask 195712  }
 0x257   : > { %v886_v48 = vpop.f32.mrf.mxu2 }
 0x258   : > { %920 = vrot.lane.b32.xlu0 %v886_v48, %s1510_s29 }
 0x25b   : > { %v844_v49 = vpop.f32.mrf.mxu0 }
 0x25f   : > { %v888_v50 = vpop.f32.mrf.mxu2  ;;  %v908_v52 = vpop.f32.mrf.mxu3 }
 0x260   : > { %926 = vrot.lane.b32.xlu1 %v908_v52, %s1511_s30  ;;  %s575_s30 = scalar_select %p574_p2, %s1491_s24, 1 }
 0x262   : > { %s577_s19 = sadd.s32 %s1228_s15, %s575_s30 }
 0x263   : > { %s1229_s13 = sshll.u32 %s577_s19, 3 }
 0x264   : > { %s600_s20 = scalar_lea.vmem %s1808_s5, %s1229_s13  ;;  %s579_s19 = scalar_lea.vmem %s1834_s0, %s1229_s13 }
 0x265   : > { %v970_v0 = vld [vmem:[%s600_s20] sm:$0xff]  ;;  %s1062_s13 = sadd.s32 %s1491_s24, %s1295_s1  ;;  %s571_s1 = scalar_lea.vmem [#allocation4], %s1227_s17 }
 0x266   : > { %v1009_v7 = vld [vmem:[%s579_s19] sm:$0xff]  ;;  %s1296_s18 = sshll.u32 %s1062_s13, 3  ;;  %s1836_s19 = sld [smem:[#allocation14_spill]] }
 0x267   : > { %v910_v53 = vpop.f32.mrf.mxu3  ;;  %s1064_s30 = scalar_lea.hbm %s1815_s12, %s1296_s18  ;;  %s1066_s13 = sshll.u32 %s571_s1, 4  ;;  %s1067_s13 = int_to_ptr.vmem [resolvable:$true] %s1066_s13 }
 0x268   : > { %s1068_s0 = sshll.u32 %s1064_s30, 4  ;;  %s1052_s20 = scalar_lea.sflag [#allocation5], %s1668_s21  ;;  %s1069_s0 = int_to_ptr.hbm [resolvable:$true] %s1068_s0 }
 0x269   : > { %s1427_s16 = sshra.s32 %s1069_s0, 4  ;;  %s1433_s17 = scalar_lea.hbm %s1815_s12, 32  ;;  %s1428_s16 = int_to_ptr.hbm [resolvable:$true] %s1427_s16 }
 0x26a   : > { %s1429_s18 = scalar_lea.hbm %s1428_s16, 8  ;;  %p1434_p6 = scmp.lt.s32.totalorder %s1428_s16, %s1815_s12 }
 0x26b   : > { %p1430_p3 = scmp.ne.s32.totalorder %s1428_s16, %s1429_s18  ;;  %p1435_p7 = scmp.lt.s32.totalorder %s1433_s17, %s1429_s18 }
 0x26c   : > { %v1392_v36 = vld [vmem:[%s1836_s19] ss:$0 sm:$0xff] }
 0x26d   : > { %p1431_p4 = pnand %p1430_p3, %p1638_p8  ;;  %p1436_p10 = por %p1435_p7, %p1434_p6 }
 0x26f   : > { %p1432_p5 = pneg %p1431_p4 }
 0x271   : > { %p1437_p11 = pnand %p1436_p10, %p1432_p5 }
 0x2a6   : > { %v915_v51 = vpop.permute.xlu2 %914 }
 0x2a7   : > { %918 = vst.msk [vmem:[#allocation2] sm:$0xff] %vm917_vm4, %v915_v51 }
 0x2ca   : > { %v921_v58 = vpop.permute.xlu0 %920 }
 0x2cb   : > { %924 = vst.msk [vmem:[#allocation2] sm:$0xff] %vm923_vm0, %v921_v58 }
 0x2d2   : > { %v927_v59 = vpop.permute.xlu1 %926 }
 0x2d3   : > { %930 = vst.msk [vmem:[#allocation2] sm:$0xff] %vm929_vm1, %v927_v59 }
 0x2da   : > { %v931_v60 = vld [vmem:[#allocation2] sm:$0xff] }
 0x2db   : > { %v932_v61 = vpack.c.bf16 %v931_v60, %v931_v60 }
 0x2dd   : > { %1284 = vmatmul.msk.bf16.vlgmr.msra.gmra.mxu0 %vm953_vm5, %v932_v61 }
 0x35a   : > { %v966_v63 = vpop.f32.mrf.mxu0 }
 0x35b   : > { %v967_v1 = vadd.f32 %v1389_v62, %v966_v63 }
 0x35d   : > { %v971_v2 = vadd.f32 %v970_v0, %v967_v1 }
 0x35f   : > { %v972_v3 = vpack.c.bf16 %v971_v2, %v971_v2 }
 0x361   : > { %1293 = vmatmul.msk.bf16.vlgmr.msra.gmra.mxu1 %vm953_vm5, %v972_v3 }
 0x362   : > { %v968_v4 = vpop.f32.mrf.mxu0 }
 0x3de   : > { %v1005_v6 = vpop.f32.mrf.mxu1 }
 0x3df   : > { %v1006_v8 = vadd.f32 %v1390_v5, %v1005_v6 }
 0x3e1   : > { %v1010_v9 = vadd.f32 %v1009_v7, %v1006_v8 }
 0x3e3   : > { %v1011_v10 = vsel %vm953_vm5, %v1010_v9, 0.0 }
 0x3e4   : > { %1012 = vadd.xlane.f32.xlu2 %v1011_v10 }
 0x3e6   : > { %v1007_v11 = vpop.f32.mrf.mxu1 }
 0x457   : > { %v1013_v19 = vpop.xlane.xlu2 %1012 }
 0x458   : > { %v1021_v20 = vmul.f32 %v1020_v18, %v1013_v19 }
 0x45a   : > { %v1022_v21 = vsub.f32 %v1010_v9, %v1021_v20 }
 0x45c   : > { %v1023_v22 = vmul.f32 %v1022_v21, %v1022_v21 }
 0x45e   : > { %v1024_v23 = vsel %vm953_vm5, %v1023_v22, 0.0 }
 0x45f   : > { %1025 = vadd.xlane.f32.xlu0 %v1024_v23 }
 0x4d2   : > { %v1026_v24 = vpop.xlane.xlu0 %1025 }
 0x4d3   : > { %v1027_v25 = vmul.f32 %v1026_v24, %v1020_v18 }
 0x4d5   : > { %v1028_v26 = vadd.f32 1e-12, %v1027_v25 }
 0x4d7   : > { %1411 = vrsqrt.f32 %v1028_v26  ;;  %vm1035_vm8 = vweird.f32 %v1028_v26 }
 0x4dd   : > { %v1412_v27 = vpop.eup %1411 }
 0x4de   : > { %v1030_v28 = vmul.f32 %v1412_v27, %v1028_v26  ;;  %vm1036_vm7 = vweird.f32 %v1412_v27 }
 0x4df   : > { %vm1037_vm9 = vmor %vm1035_vm8, %vm1036_vm7 }
 0x4e0   : > { %v1031_v29 = vmul.f32 %v1412_v27, %v1030_v28 }
 0x4e2   : > { %v1032_v30 = vmul.f32 0.5, %v1031_v29 }
 0x4e4   : > { %v1033_v31 = vsub.f32 1.5, %v1032_v30 }
 0x4e6   : > { %v1034_v32 = vmul.f32 %v1412_v27, %v1033_v31 }
 0x4e8   : > { %v1038_v34 = vsel %vm1037_vm9, %v1412_v27, %v1034_v32 }
 0x4e9   : > { %v1039_v35 = vmul.f32 %v1038_v34, %v1022_v21 }
 0x4eb   : > { %v1044_v37 = vmul.f32 %v1391_v33, %v1039_v35 }
 0x4ed   : > { %v1049_v38 = vadd.f32 %v1392_v36, %v1044_v37 }
 0x4ef   : > { %1050 = vst.msk [vmem:[%s571_s1] sm:$0xff] %vm953_vm5, %v1049_v38 }
 0x4f0   : > { %1440 = shalt.err (!%p1437_p11)
}
 0x4f1   : > { %1313 = dma.vmem_to_hbm [thread:$0]  (%p1638_p8), %s1067_s13, 128, %s1069_s0, %s1052_s20  }
 0x4f2 PF: > { %s1837_s21 = sld [smem:[#allocation7_spill]]  ;;  %p1319_p12 = scmp.ge.s32.totalorder %s1507_s28, 2 }
 0x4f4   : > { %p1316_p13 = pnand %p1319_p12, %p1642_p9 }
 0x4f6   : > { %p1317_p0 = pneg %p1316_p13 }
 0x4f8   : > { %s1080_s19 = sand.u32 1, %s1837_s21  }
 0x4f9   : > { %s1081_s1 = scalar_lea.sflag [#allocation5], %s1080_s19 }
 0x4fa   : > { %1474 = dma.done.wait (%p1317_p0), %s1081_s1, 128  }
 0x4fb   : > { %1476 = vsyncadd (%p1317_p0), %s1081_s1, 4294967168  ;;  %s25_s28 = sadd.s32 1, %s1507_s28   ;;  %s1839_s0 = sld [smem:[#allocation8_spill]] }
 0x4fc   : > { %p22_p1 = scmp.ge.s32.totalorder %s25_s28, 6   ;;  %s1840_s13 = sld [smem:[#allocation9_spill]] }
 0x4fd   : > { %s1841_s21 = smov %s1483_s22  ;;  %s1842_s22 = smov %s1487_s23 }
 0x4fe   : > { %s1843_s23 = smov %s1650_s11  ;;  %s1844_s24 = smov %s1499_s26 }
 0x4ff   : > { %s1845_s25 = smov %s1503_s27  ;;  %24 = sbr.rel (!%p22_p1) target bundleno = 9 (0x9), region = 164 }
 0x501   : > { %s1846_s26 = smov %s1839_s0 }
 0x502   : > { %s1847_s27 = smov %s1840_s13 }
 0x504   :  { %1087 = vsyncpa [#allocation5], 1 }
 0x505   :  { %1089 = vsyncpa [#allocation5 + $0x1], 1 }

</bundles_post_ra>
